<compile_context>
chip_gen: v6e
topology: v6e:2x2x1
jax: 0.10.0
libtpu: 0.0.40
codegen_flags: <defaults>
</compile_context>

<pallas_src>
import functools

import jax
import jax.numpy as jnp
from jax.experimental import pallas as pl
from jax.experimental.pallas import tpu as pltpu

IN_F, HID_F, OUT_F = 2, 3, 1      # module dims from nn.Linear(2,3), nn.Linear(3,1)
PAD_IN = 8                        # padded input feature width (HBM-facing)
PAD_HID = 128                     # padded hidden width (VMEM-only)
PAD_OUT = 8                       # padded output width (HBM-facing)
MAX_TB = 1024                     # max batch tile (8-aligned, fits all chip gens)


def _mlp_kernel(x_ref, w1_ref, b1_ref, w2_ref, b2_ref, o_ref):
    # h = sigmoid(x @ W1 + b1)        (tb, 8) @ (8, 128) -> (tb, 128)
    h = jnp.dot(x_ref[...], w1_ref[...], preferred_element_type=jnp.float32)
    h = jax.nn.sigmoid(h + b1_ref[...])
    # y = sigmoid(h @ W2 + b2)        (tb, 128) @ (128, 8) -> (tb, 8)
    y = jnp.dot(h, w2_ref[...], preferred_element_type=jnp.float32)
    o_ref[...] = jax.nn.sigmoid(y + b2_ref[...])


def pad_params(w1, b1, w2, b2):
    """Pad params to TPU-friendly shapes ONCE (hoisted out of the hot path)."""
    w1p = jnp.zeros((PAD_IN, PAD_HID), jnp.float32).at[:IN_F, :HID_F].set(w1)
    b1p = jnp.zeros((1, PAD_HID), jnp.float32).at[0, :HID_F].set(b1)
    w2p = jnp.zeros((PAD_HID, PAD_OUT), jnp.float32).at[:HID_F, :OUT_F].set(w2)
    b2p = jnp.zeros((1, PAD_OUT), jnp.float32).at[0, :OUT_F].set(b2)
    return w1p, b1p, w2p, b2p


@jax.jit
def net_forward_padded(x, w1p, b1p, w2p, b2p):
    """x: (B, 2) f32, pre-padded params -> (B, 1) f32 (Net.forward semantics)."""
    B = x.shape[0]
    # Batch tile: 8-aligned, capped so per-step VMEM stays tiny on every chip.
    tb = min(MAX_TB, ((B + 7) // 8) * 8)
    Bp = ((B + tb - 1) // tb) * tb

    xp = jnp.zeros((Bp, PAD_IN), jnp.float32).at[:B, :IN_F].set(x)

    flops = 2 * Bp * (PAD_IN * PAD_HID + PAD_HID * PAD_OUT)
    transcendentals = Bp * (PAD_HID + PAD_OUT)                       # sigmoids
    bytes_accessed = 4 * (Bp * PAD_IN + Bp * PAD_OUT
                          + PAD_IN * PAD_HID + PAD_HID
                          + PAD_HID * PAD_OUT + PAD_OUT)

    out_padded = pl.pallas_call(
        _mlp_kernel,
        out_shape=jax.ShapeDtypeStruct((Bp, PAD_OUT), jnp.float32),
        grid_spec=pl.GridSpec(
            grid=(Bp // tb,),
            in_specs=[
                pl.BlockSpec((tb, PAD_IN), lambda i: (i, 0)),        # x tile
                pl.BlockSpec((PAD_IN, PAD_HID), lambda i: (0, 0)),   # W1 (resident)
                pl.BlockSpec((1, PAD_HID), lambda i: (0, 0)),        # b1 (resident)
                pl.BlockSpec((PAD_HID, PAD_OUT), lambda i: (0, 0)),  # W2 (resident)
                pl.BlockSpec((1, PAD_OUT), lambda i: (0, 0)),        # b2 (resident)
            ],
            out_specs=pl.BlockSpec((tb, PAD_OUT), lambda i: (i, 0)),
        ),
        compiler_params=pltpu.CompilerParams(
            dimension_semantics=("parallel",)),      # lets v7x use both TCs
        cost_estimate=pl.CostEstimate(
            flops=flops,
            transcendentals=transcendentals,
            bytes_accessed=bytes_accessed),
    )(xp, w1p, b1p, w2p, b2p)

    return out_padded[:B, :OUT_F]


def net_forward(x, w1, b1, w2, b2):
    """Convenience wrapper taking unpadded params (pads them each call)."""
    return net_forward_padded(x, *pad_params(w1, b1, w2, b2))


def init_params(key):
    """Deterministic init matching the PyTorch module's parameter shapes.

    PyTorch stores Linear weights as (out, in); we store the transpose
    (in, out) so the kernel can do x @ W directly.
    """
    k1, k2, k3, k4 = jax.random.split(key, 4)
    lim1 = 1.0 / jnp.sqrt(IN_F)
    lim2 = 1.0 / jnp.sqrt(HID_F)
    w1 = jax.random.uniform(k1, (IN_F, HID_F), jnp.float32, -lim1, lim1)
    b1 = jax.random.uniform(k2, (HID_F,), jnp.float32, -lim1, lim1)
    w2 = jax.random.uniform(k3, (HID_F, OUT_F), jnp.float32, -lim2, lim2)
    b2 = jax.random.uniform(k4, (OUT_F,), jnp.float32, -lim2, lim2)
    return w1, b1, w2, b2


if __name__ == "__main__":
    key = jax.random.PRNGKey(0)
    kx, kx2, kp = jax.random.split(key, 3)

    w1, b1, w2, b2 = init_params(kp)
    # Pad weights once (steady-state usage: reuse padded params every call).
    w1p, b1p, w2p, b2p = pad_params(w1, b1, w2, b2)

    # Case 1: batch divisible by 8.
    batch = 8
    x = jax.random.normal(kx, (batch, IN_F), jnp.float32)
    out = jax.block_until_ready(net_forward_padded(x, w1p, b1p, w2p, b2p))
    ref = jax.nn.sigmoid(jax.nn.sigmoid(x @ w1 + b1) @ w2 + b2)
    assert out.shape == (batch, OUT_F)
    assert jnp.allclose(out, ref, atol=1e-5, rtol=1e-5)

    # Case 2: batch NOT divisible by 8 (exercises the batch-padding path).
    batch2 = 13
    x2 = jax.random.normal(kx2, (batch2, IN_F), jnp.float32)
    out2 = jax.block_until_ready(net_forward_padded(x2, w1p, b1p, w2p, b2p))
    ref2 = jax.nn.sigmoid(jax.nn.sigmoid(x2 @ w1 + b1) @ w2 + b2)
    assert out2.shape == (batch2, OUT_F)
    assert jnp.allclose(out2, ref2, atol=1e-5, rtol=1e-5)

    print("KERNEL_OK")
</pallas_src>

<mosaic_0001>
module attributes {stable_mosaic.version = 11 : i64} {
  func.func @_mlp_kernel(%arg0: i32, %arg1: memref<8x8xf32, #tpu.memory_space<vmem>>, %arg2: memref<8x128xf32, #tpu.memory_space<vmem>>, %arg3: memref<1x128xf32, #tpu.memory_space<vmem>>, %arg4: memref<128x8xf32, #tpu.memory_space<vmem>>, %arg5: memref<1x8xf32, #tpu.memory_space<vmem>>, %arg6: memref<8x8xf32, #tpu.memory_space<vmem>>) attributes {dimension_semantics = [#tpu.dimension_semantics<parallel>], iteration_bounds = array<i64: 1>, scalar_prefetch = 0 : i64, scratch_operands = 0 : i64, tpu.core_type = #tpu.core_type<tc>, window_params = [{transform_indices = @transform_0, window_bounds = array<i64: 8, 8>}, {pipeline_mode = #tpu.pipeline_mode<synchronous>, transform_indices = @transform_1, window_bounds = array<i64: 8, 128>}, {pipeline_mode = #tpu.pipeline_mode<synchronous>, transform_indices = @transform_2, window_bounds = array<i64: 1, 128>}, {pipeline_mode = #tpu.pipeline_mode<synchronous>, transform_indices = @transform_3, window_bounds = array<i64: 128, 8>}, {pipeline_mode = #tpu.pipeline_mode<synchronous>, transform_indices = @transform_4, window_bounds = array<i64: 1, 8>}, {transform_indices = @transform_5, window_bounds = array<i64: 8, 8>}]} {
    %c0 = arith.constant 0 : index
    %c0_0 = arith.constant 0 : index
    %0 = vector.load %arg1[%c0, %c0_0] : memref<8x8xf32, #tpu.memory_space<vmem>>, vector<8x8xf32>
    %c0_1 = arith.constant 0 : index
    %c0_2 = arith.constant 0 : index
    %1 = vector.load %arg2[%c0_1, %c0_2] : memref<8x128xf32, #tpu.memory_space<vmem>>, vector<8x128xf32>
    %cst = arith.constant dense<0.000000e+00> : vector<8x128xf32>
    %2 = tpu.matmul %0, %1, %cst {dimension_numbers = #tpu.dot_dimension_numbers<[1], [0], [0], [1], [0, 0, 1, 1], [], []>} : vector<8x8xf32>, vector<8x128xf32>, vector<8x128xf32> -> vector<8x128xf32>
    %c0_3 = arith.constant 0 : index
    %c0_4 = arith.constant 0 : index
    %3 = vector.load %arg3[%c0_3, %c0_4] : memref<1x128xf32, #tpu.memory_space<vmem>>, vector<1x128xf32>
    %4 = vector.broadcast %3 : vector<1x128xf32> to vector<8x128xf32>
    %5 = arith.addf %2, %4 : vector<8x128xf32>
    %6 = arith.negf %5 : vector<8x128xf32>
    %7 = math.exp %6 : vector<8x128xf32>
    %cst_5 = arith.constant 1.000000e+00 : f32
    %8 = vector.broadcast %cst_5 : f32 to vector<8x128xf32>
    %9 = arith.addf %8, %7 : vector<8x128xf32>
    %10 = arith.divf %8, %9 : vector<8x128xf32>
    %c0_6 = arith.constant 0 : index
    %c0_7 = arith.constant 0 : index
    %11 = vector.load %arg4[%c0_6, %c0_7] : memref<128x8xf32, #tpu.memory_space<vmem>>, vector<128x8xf32>
    %cst_8 = arith.constant dense<0.000000e+00> : vector<8x8xf32>
    %12 = tpu.matmul %10, %11, %cst_8 {dimension_numbers = #tpu.dot_dimension_numbers<[1], [0], [0], [1], [0, 0, 1, 1], [], []>} : vector<8x128xf32>, vector<128x8xf32>, vector<8x8xf32> -> vector<8x8xf32>
    %c0_9 = arith.constant 0 : index
    %c0_10 = arith.constant 0 : index
    %13 = vector.load %arg5[%c0_9, %c0_10] : memref<1x8xf32, #tpu.memory_space<vmem>>, vector<1x8xf32>
    %14 = vector.broadcast %13 : vector<1x8xf32> to vector<8x8xf32>
    %15 = arith.addf %12, %14 : vector<8x8xf32>
    %16 = arith.negf %15 : vector<8x8xf32>
    %17 = math.exp %16 : vector<8x8xf32>
    %cst_11 = arith.constant 1.000000e+00 : f32
    %18 = vector.broadcast %cst_11 : f32 to vector<8x8xf32>
    %19 = arith.addf %18, %17 : vector<8x8xf32>
    %20 = arith.divf %18, %19 : vector<8x8xf32>
    %c0_12 = arith.constant 0 : index
    %c0_13 = arith.constant 0 : index
    %21 = vector.load %arg6[%c0_12, %c0_13] : memref<8x8xf32, #tpu.memory_space<vmem>>, vector<8x8xf32>
    tpu.vector_store %arg6[%c0_12, %c0_13], %20 {strides = array<i32>} : memref<8x8xf32, #tpu.memory_space<vmem>>, vector<8x8xf32>,
    return
  }
  func.func @transform_0(%arg0: i32) -> (i32, i32) {
    %c0_i32 = arith.constant 0 : i32
    %c0_i32_0 = arith.constant 0 : i32
    return %arg0, %c0_i32 : i32, i32
  }
  func.func @transform_1(%arg0: i32) -> (i32, i32) {
    %c0_i32 = arith.constant 0 : i32
    %c0_i32_0 = arith.constant 0 : i32
    %c0_i32_1 = arith.constant 0 : i32
    return %c0_i32, %c0_i32_0 : i32, i32
  }
  func.func @transform_2(%arg0: i32) -> (i32, i32) {
    %c0_i32 = arith.constant 0 : i32
    %c0_i32_0 = arith.constant 0 : i32
    %c0_i32_1 = arith.constant 0 : i32
    return %c0_i32, %c0_i32_0 : i32, i32
  }
  func.func @transform_3(%arg0: i32) -> (i32, i32) {
    %c0_i32 = arith.constant 0 : i32
    %c0_i32_0 = arith.constant 0 : i32
    %c0_i32_1 = arith.constant 0 : i32
    return %c0_i32, %c0_i32_0 : i32, i32
  }
  func.func @transform_4(%arg0: i32) -> (i32, i32) {
    %c0_i32 = arith.constant 0 : i32
    %c0_i32_0 = arith.constant 0 : i32
    %c0_i32_1 = arith.constant 0 : i32
    return %c0_i32, %c0_i32_0 : i32, i32
  }
  func.func @transform_5(%arg0: i32) -> (i32, i32) {
    %c0_i32 = arith.constant 0 : i32
    %c0_i32_0 = arith.constant 0 : i32
    return %arg0, %c0_i32 : i32, i32
  }
}

</mosaic_0001>

<bundles_post_ra>
// kernel: net_forward_padded.1
= control target key start
LH: loop header
LB: loop body
LE: loop exit
PB: predicated region body
PF: predicated region fallthrough
CT: control target
= control target key end

     0   :  { %vm29_vm0 = vcmask 64512   ;;  %v287_v0 = vmov 0.0   ;;  %vm288_vm1 = vmmov 0   ;;  %s384_s1 = inlined_call_operand.vmem [shape: f32[8,128], index: 1, kind: input, shape index: {}]   ;;  %s385_s0 = inlined_call_operand.vmem [shape: f32[8,8], index: 0, kind: input, shape index: {}]   ;;  %s386_s3 = inlined_call_operand.vmem [shape: f32[128,8], index: 3, kind: input, shape index: {}]   ;;  %s387_s2 = inlined_call_operand.vmem [shape: f32[1,128], index: 2, kind: input, shape index: {}]   ;;  %s388_s4 = inlined_call_operand.vmem [shape: f32[1,8], index: 4, kind: input, shape index: {}]   ;;  %s389_s5 = inlined_call_operand.vmem [shape: f32[8,8], index: 5, kind: output, shape index: {}]  }
   0x1   :  { %237 = vmatprep.subr.mxu0 %v287_v0  ;;  %v21_v1 = vld [vmem:[%s384_s1] sm:$0xff]  ;;  %239 = vmatprep.mubr.msk.f32.mxu0 %vm288_vm1, %v287_v0  ;;  %v124_v3 = vld [vmem:[%s386_s3 + $0x78] sm:$0xff]  ;;  %v123_v4 = vld [vmem:[%s386_s3 + $0x70] sm:$0xff] }
   0x2   :  { %v20_v2 = vld [vmem:[%s385_s0] sm:$0xff]  ;;  %238 = vmatpush3.msra.mxu0 %v21_v1  ;;  %242 = vmatprep.subr.mxu1 %v287_v0  ;;  %v122_v5 = vld [vmem:[%s386_s3 + $0x68] sm:$0xff]  ;;  %v120_v7 = vld [vmem:[%s386_s3 + $0x58] sm:$0xff] }
   0x3   :  { %240 = vmatmul.mubr.msk.f32.vlgmr.msra.gmra.mxu0 %vm29_vm0, %v20_v2  ;;  %274 = vmatprep.mubr.msk.f32.mxu1 %vm288_vm1, %v287_v0  ;;  %v121_v6 = vld [vmem:[%s386_s3 + $0x60] sm:$0xff]  ;;  %v119_v8 = vld [vmem:[%s386_s3 + $0x50] sm:$0xff]  ;;  %v118_v9 = vld [vmem:[%s386_s3 + $0x48] sm:$0xff] }
   0x4   :  { %243 = vmatpush3.msra.mxu1 %v124_v3  ;;  %v117_v10 = vld [vmem:[%s386_s3 + $0x40] sm:$0xff]  ;;  %v116_v11 = vld [vmem:[%s386_s3 + $0x38] sm:$0xff]  ;;  %v115_v12 = vld [vmem:[%s386_s3 + $0x30] sm:$0xff] }
   0x5   :  { %244 = vmatprep.subr.mxu1 %v287_v0  ;;  %v114_v13 = vld [vmem:[%s386_s3 + $0x28] sm:$0xff]  ;;  %v113_v14 = vld [vmem:[%s386_s3 + $0x20] sm:$0xff]  ;;  %v112_v15 = vld [vmem:[%s386_s3 + $0x18] sm:$0xff] }
   0x6   :  { %245 = vmatpush3.msra.mxu1 %v123_v4  ;;  %v111_v16 = vld [vmem:[%s386_s3 + $0x10] sm:$0xff]  ;;  %v110_v17 = vld [vmem:[%s386_s3 + $0x8] sm:$0xff]  ;;  %v109_v18 = vld [vmem:[%s386_s3] sm:$0xff] }
   0x7   :  { %246 = vmatprep.subr.mxu1 %v287_v0  ;;  %v213_v19 = vld [vmem:[%s387_s2] ss:$0 sm:$0xff] }
   0x8   :  { %247 = vmatpush3.msra.mxu1 %v122_v5  ;;  %v216_v27 = vld [vmem:[%s388_s4] ss:$0 sm:$0xff] }
   0x9   :  { %248 = vmatprep.subr.mxu1 %v287_v0 }
   0xa   :  { %249 = vmatpush3.msra.mxu1 %v121_v6 }
   0xb   :  { %250 = vmatprep.subr.mxu1 %v287_v0 }
   0xc   :  { %251 = vmatpush3.msra.mxu1 %v120_v7 }
   0xd   :  { %252 = vmatprep.subr.mxu1 %v287_v0 }
   0xe   :  { %253 = vmatpush3.msra.mxu1 %v119_v8 }
   0xf   :  { %254 = vmatprep.subr.mxu1 %v287_v0 }
  0x10   :  { %255 = vmatpush3.msra.mxu1 %v118_v9 }
  0x11   :  { %256 = vmatprep.subr.mxu1 %v287_v0 }
  0x12   :  { %257 = vmatpush3.msra.mxu1 %v117_v10 }
  0x13   :  { %258 = vmatprep.subr.mxu1 %v287_v0 }
  0x14   :  { %259 = vmatpush3.msra.mxu1 %v116_v11 }
  0x15   :  { %260 = vmatprep.subr.mxu1 %v287_v0 }
  0x16   :  { %261 = vmatpush3.msra.mxu1 %v115_v12 }
  0x17   :  { %262 = vmatprep.subr.mxu1 %v287_v0 }
  0x18   :  { %263 = vmatpush3.msra.mxu1 %v114_v13 }
  0x19   :  { %264 = vmatprep.subr.mxu1 %v287_v0 }
  0x1a   :  { %265 = vmatpush3.msra.mxu1 %v113_v14 }
  0x1b   :  { %266 = vmatprep.subr.mxu1 %v287_v0 }
  0x1c   :  { %267 = vmatpush3.msra.mxu1 %v112_v15 }
  0x1d   :  { %268 = vmatprep.subr.mxu1 %v287_v0 }
  0x1e   :  { %269 = vmatpush3.msra.mxu1 %v111_v16 }
  0x1f   :  { %270 = vmatprep.subr.mxu1 %v287_v0 }
  0x20   :  { %271 = vmatpush3.msra.mxu1 %v110_v17 }
  0x21   :  { %272 = vmatprep.subr.mxu1 %v287_v0 }
  0x22   :  { %273 = vmatpush3.msra.mxu1 %v109_v18 }
  0xc3   :  { %v99_v20 = vpop.f32.mrf.mxu0 }
  0xc4   :  { %v100_v21 = vadd.f32 %v213_v19, %v99_v20 }
  0xc5   :  { %v241_v22 = vpop.f32.mrf.mxu0 }
  0xc6   :  { %v215_v23 = vmul.f32 -1.442695, %v100_v21 }
  0xc8   :  { %279 = vpow2.f32 %v215_v23 }
  0xd5   :  { %v280_v24 = vpop.eup %279 }
  0xd6   :  { %v106_v25 = vadd.f32 1.0, %v280_v24 }
  0xd8   :  { %281 = vrcp.f32 %v106_v25 }
  0xe5   :  { %v282_v26 = vpop.eup %281 }
  0xe6   :  { %275 = vmatmul.mubr.f32.vlgmr.msra.gmra.mxu1 %v282_v26 }
 0x1a6   :  { %v198_v28 = vpop.f32.mrf.mxu1 }
 0x1a7   :  { %v199_v29 = vadd.f32 %v216_v27, %v198_v28 }
 0x1a8   :  { %v276_v30 = vpop.f32.mrf.mxu1 }
 0x1a9   :  { %v217_v31 = vmul.f32 -1.442695, %v199_v29 }
 0x1ab   :  { %283 = vpow2.f32 %v217_v31 }
 0x1b8   :  { %v284_v32 = vpop.eup %283 }
 0x1b9   :  { %v205_v33 = vadd.f32 1.0, %v284_v32 }
 0x1bb   :  { %285 = vrcp.f32 %v205_v33 }
 0x1c8   :  { %v286_v34 = vpop.eup %285 }
 0x1c9   :  { %208 = vst.msk [vmem:[%s389_s5] sm:$0xff] %vm29_vm0, %v286_v34 }

</bundles_post_ra>
